<compile_context>
chip_gen: v7x
topology: tpu7x:2x2x1
jax: 0.10.0
libtpu: 0.0.40
codegen_flags: <defaults>
</compile_context>

<pallas_src>
import jax
import jax.numpy as jnp
from jax.experimental import pallas as pl
from jax.experimental.pallas import tpu as pltpu


def _vfe_kernel(feat_ref, npts_ref, out_ref):
    # feat_ref : (M, F, TN)  point features, voxel axis on lanes
    # npts_ref : (1, TN)     valid-point count per voxel (float32)
    # out_ref  : (F, TN)     per-voxel mean feature (float32)
    feat = feat_ref[...].astype(jnp.float32)                 # force_fp32 compute
    s = jnp.sum(feat, axis=0)                                # (F, TN): VPU adds over M
    inv_n = pl.reciprocal(npts_ref[...], approx=False)       # (1, TN), EUP slot
    out_ref[...] = s * inv_n                                 # broadcasts over F


def hard_simple_vfe(features, num_points, coors=None, *, num_features=4,
                    tile_n=1024):
    """Pallas implementation of HardSimpleVFE.forward.

    Args:
        features:   (N, M, C) float array, C >= num_features.
        num_points: (N,) integer array, number of valid points per voxel.
        coors:      unused (API parity with the PyTorch module).

    Returns:
        (N, num_features) float32 array of per-voxel mean features.
    """
    del coors  # not used by HardSimpleVFE
    N, M, C = features.shape
    F = num_features

    # Lane-dense layout: fold the channel slice into a single XLA
    # slice+transpose -> (M, F, N); the large voxel axis becomes the minor/lane
    # axis. The tiny (F, N) result is transposed back at the end.
    feat_t = jnp.transpose(features[:, :, :F], (1, 2, 0))      # (M, F, N)
    npts = num_points.astype(jnp.float32).reshape(1, N)        # (1, N)

    # Tile sizing: multiple of 128 on the lane axis, capped by (padded) N.
    # Keeping tile_n <= 1024-2048 leaves >=2 grid steps on realistic voxel
    # counts so both v7x TensorCores get work; VMEM per double-buffered block
    # stays ~0.5 MiB, well within every chip's scoped budget.
    tile_n = max(128, (tile_n // 128) * 128)
    tile_n = min(tile_n, pl.cdiv(N, 128) * 128)
    n_pad = pl.cdiv(N, tile_n) * tile_n
    if n_pad != N:
        feat_t = jnp.pad(feat_t, ((0, 0), (0, 0), (0, n_pad - N)))
        # Padded voxels get count 1 so the reciprocal stays finite; their rows
        # are sliced off below.
        npts = jnp.pad(npts, ((0, 0), (0, n_pad - N)), constant_values=1.0)

    grid = (n_pad // tile_n,)
    out_t = pl.pallas_call(
        _vfe_kernel,
        out_shape=jax.ShapeDtypeStruct((F, n_pad), jnp.float32),
        grid_spec=pltpu.PrefetchScalarGridSpec(
            num_scalar_prefetch=0,
            grid=grid,
            in_specs=[
                pl.BlockSpec((M, F, tile_n), lambda i: (0, 0, i)),
                pl.BlockSpec((1, tile_n), lambda i: (0, i)),
            ],
            out_specs=pl.BlockSpec((F, tile_n), lambda i: (0, i)),
        ),
        compiler_params=pltpu.CompilerParams(
            dimension_semantics=("parallel",),
        ),
    )(feat_t, npts)

    # Tiny (F, N) -> (N, F) transpose back; drop padded voxels.
    return out_t[:, :N].T


if __name__ == "__main__":
    key = jax.random.PRNGKey(0)
    k_feat, k_npts, k_coors = jax.random.split(key, 3)

    # Small deterministic example: N not a multiple of the tile (exercises
    # padding) and C > num_features (exercises the fused channel slice).
    N, M, C = 200, 16, 5
    num_features = 4
    features = jax.random.normal(k_feat, (N, M, C), dtype=jnp.float32)
    num_points = jax.random.randint(k_npts, (N,), minval=1, maxval=M + 1,
                                    dtype=jnp.int32)
    coors = jax.random.randint(k_coors, (N, 4), minval=0, maxval=32,
                               dtype=jnp.int32)   # unused, API parity

    out = hard_simple_vfe(features, num_points, coors,
                          num_features=num_features)
    out = jax.block_until_ready(out)

    # Pure-JAX reference (same math as the PyTorch forward).
    ref = (features[:, :, :num_features].sum(axis=1)
           / num_points.astype(jnp.float32)[:, None])
    assert out.shape == (N, num_features)
    assert jnp.allclose(out, ref, atol=1e-5, rtol=1e-5), "mismatch vs reference"

    print("KERNEL_OK")
</pallas_src>

<mosaic_0001>
module attributes {stable_mosaic.version = 11 : i64} {
  func.func @_vfe_kernel(%arg0: i32, %arg1: memref<16x4x256xf32, #tpu.memory_space<vmem>>, %arg2: memref<1x256xf32, #tpu.memory_space<vmem>>, %arg3: memref<4x256xf32, #tpu.memory_space<vmem>>) attributes {dimension_semantics = [#tpu.dimension_semantics<parallel>], iteration_bounds = array<i64: 1>, scalar_prefetch = 0 : i64, scratch_operands = 0 : i64, tpu.core_type = #tpu.core_type<tc>, window_params = [{transform_indices = @transform_0, window_bounds = array<i64: 16, 4, 256>}, {transform_indices = @transform_1, window_bounds = array<i64: 1, 256>}, {transform_indices = @transform_2, window_bounds = array<i64: 4, 256>}]} {
    %c0 = arith.constant 0 : index
    %c0_0 = arith.constant 0 : index
    %c0_1 = arith.constant 0 : index
    %0 = vector.load %arg1[%c0, %c0_0, %c0_1] : memref<16x4x256xf32, #tpu.memory_space<vmem>>, vector<16x4x256xf32>
    %cst = arith.constant dense<0.000000e+00> : vector<4x256xf32>
    %1 = vector.multi_reduction <add>, %0, %cst [0] : vector<16x4x256xf32> to vector<4x256xf32>
    %c0_2 = arith.constant 0 : index
    %c0_3 = arith.constant 0 : index
    %2 = vector.load %arg2[%c0_2, %c0_3] : memref<1x256xf32, #tpu.memory_space<vmem>>, vector<1x256xf32>
    %3 = tpu.reciprocal %2 : vector<1x256xf32> -> vector<1x256xf32>
    %4 = vector.broadcast %3 : vector<1x256xf32> to vector<4x256xf32>
    %5 = arith.mulf %1, %4 : vector<4x256xf32>
    %c0_4 = arith.constant 0 : index
    %c0_5 = arith.constant 0 : index
    %6 = vector.load %arg3[%c0_4, %c0_5] : memref<4x256xf32, #tpu.memory_space<vmem>>, vector<4x256xf32>
    tpu.vector_store %arg3[%c0_4, %c0_5], %5 {strides = array<i32>} : memref<4x256xf32, #tpu.memory_space<vmem>>, vector<4x256xf32>,
    return
  }
  func.func @transform_0(%arg0: i32) -> (i32, i32, i32) {
    %c0_i32 = arith.constant 0 : i32
    %c0_i32_0 = arith.constant 0 : i32
    %c0_i32_1 = arith.constant 0 : i32
    return %c0_i32, %c0_i32_0, %arg0 : i32, i32, i32
  }
  func.func @transform_1(%arg0: i32) -> (i32, i32) {
    %c0_i32 = arith.constant 0 : i32
    %c0_i32_0 = arith.constant 0 : i32
    return %c0_i32, %arg0 : i32, i32
  }
  func.func @transform_2(%arg0: i32) -> (i32, i32) {
    %c0_i32 = arith.constant 0 : i32
    %c0_i32_0 = arith.constant 0 : i32
    return %c0_i32, %arg0 : i32, i32
  }
}

</mosaic_0001>

<bundles_post_ra>
// kernel: tpu_custom_call.1
= control target key start
LH: loop header
LB: loop body
LE: loop exit
PB: predicated region body
PF: predicated region fallthrough
CT: control target
= control target key end

     0   :  { %7 = vsyncpa [#allocation3], 0  ;;  %s336_s0 = inlined_call_operand.hbm [shape: f32[16,4,256], index: 0, kind: input, shape index: {}]   ;;  %s337_s1 = inlined_call_operand.vmem [shape: f32[1,256], index: 1, kind: input, shape index: {}]   ;;  %s338_s2 = inlined_call_operand.hbm [shape: f32[4,256], index: 2, kind: output, shape index: {}]  }
   0x1   :  { %8 = vsyncpa [#allocation4], 0  ;;  %s258_s9 = smov [#allocation2]   ;;  %s210_s13 = scalar_lea.hbm %s336_s0, 2048 }
   0x2   :  { %s14_s10 = sshll.u32 %s258_s9, 4  ;;  %p211_p0 = scmp.ne.s32.totalorder %s336_s0, %s210_s13  ;;  %s15_s10 = int_to_ptr.vmem [resolvable:$true] %s14_s10 }
   0x3   :  { %p214_p1 = scmp.lt.u32.totalorder %s210_s13, %s336_s0 }
   0x5   :  { %p216_p2 = pnand %p214_p1, %p211_p0 }
   0x7   :  { %219 = shalt.err (!%p216_p2)
}
   0x8   :  { %s220_s18 = scalar_lea.vmem %s15_s10, 2048  ;;  %p225_p4 = scmp.lt.s32.totalorder %s15_s10, %s15_s10 }
   0x9   :  { %p221_p3 = scmp.ne.s32.totalorder %s15_s10, %s220_s18  ;;  %p226_p5 = scmp.lt.s32.totalorder %s220_s18, %s220_s18 }
   0xb   :  { %p227_p6 = por %p226_p5, %p225_p4 }
   0xd   :  { %p228_p7 = pnand %p227_p6, %p221_p3 }
   0xf   :  { %231 = shalt.err (!%p228_p7)
}
  0x10   :  { %s259_s19 = smov 128   ;;  %s260_s20 = smov 8  }
  0x11   :  { %20 = dma.hbm_to_vmem [thread:$0]  %s336_s0, 2048, %s15_s10, [#allocation3], %s259_s19, %s259_s19, %s260_s20  }
  0x12   :  { %254 = dma.done.wait [#allocation3], 2048  }
  0x13   :  { %255 = vsyncadd [#allocation3], 4294965248  ;;  %vm90_vm0 = vcmask 1043456   ;;  %v26_v0 = vld [vmem:[#allocation2] sm:$0xff]  ;;  %v27_v1 = vld [vmem:[#allocation2 + $0x8] sm:$0xff] }
  0x14   :  { %v91_v2 = vsel %vm90_vm0, %v26_v0, 0.0  ;;  %v92_v3 = vsel %vm90_vm0, %v27_v1, 0.0  ;;  %v28_v4 = vld [vmem:[#allocation2 + $0x10] sm:$0xff]  ;;  %v29_v7 = vld [vmem:[#allocation2 + $0x18] sm:$0xff]  ;;  %v30_v8 = vld [vmem:[#allocation2 + $0x20] sm:$0xff]  ;;  %v58_v9 = vcombine.high %v26_v0, %v26_v0  ;;  %v59_v11 = vcombine.high %v27_v1, %v27_v1 }
  0x15   :  { %v93_v5 = vadd.f32 %v92_v3, %v91_v2  ;;  %v94_v6 = vsel %vm90_vm0, %v28_v4, 0.0  ;;  %v60_v12 = vcombine.high %v28_v4, %v28_v4  ;;  %v96_v13 = vsel %vm90_vm0, %v29_v7, 0.0  ;;  %v31_v15 = vld [vmem:[#allocation2 + $0x28] sm:$0xff]  ;;  %v32_v19 = vld [vmem:[#allocation2 + $0x30] sm:$0xff]  ;;  %v33_v26 = vld [vmem:[#allocation2 + $0x38] sm:$0xff] }
  0x16   :  { %v98_v14 = vsel %vm90_vm0, %v30_v8, 0.0  ;;  %v61_v17 = vcombine.high %v29_v7, %v29_v7  ;;  %v100_v18 = vsel %vm90_vm0, %v31_v15, 0.0  ;;  %v62_v20 = vcombine.high %v30_v8, %v30_v8  ;;  %v34_v32 = vld [vmem:[#allocation2 + $0x40] sm:$0xff]  ;;  %v35_v38 = vld [vmem:[#allocation2 + $0x48] sm:$0xff]  ;;  %v36_v44 = vld [vmem:[#allocation2 + $0x50] sm:$0xff] }
  0x17   :  { %v95_v10 = vadd.f32 %v94_v6, %v93_v5  ;;  %v102_v22 = vsel %vm90_vm0, %v32_v19, 0.0  ;;  %v122_v23 = vsel %vm90_vm0, %v58_v9, 0.0  ;;  %v123_v24 = vsel %vm90_vm0, %v59_v11, 0.0  ;;  %v37_v50 = vld [vmem:[#allocation2 + $0x58] sm:$0xff]  ;;  %v153_v53 = vld [vmem:[%s337_s1] sm:$0x3] }
  0x18   :  { %v125_v25 = vsel %vm90_vm0, %v60_v12, 0.0  ;;  %v124_v28 = vadd.f32 %v123_v24, %v122_v23  ;;  %v63_v29 = vcombine.high %v31_v15, %v31_v15  ;;  %v104_v30 = vsel %vm90_vm0, %v33_v26, 0.0  ;;  %v38_v57 = vld [vmem:[#allocation2 + $0x60] sm:$0xff]  ;;  %v39_v63 = vld [vmem:[#allocation2 + $0x68] sm:$0xff]  ;;  %s261_s1 = smov [#allocation5]  }
  0x19   :  { %v97_v16 = vadd.f32 %v96_v13, %v95_v10  ;;  %v127_v31 = vsel %vm90_vm0, %v61_v17, 0.0  ;;  %v64_v35 = vcombine.high %v32_v19, %v32_v19  ;;  %v106_v36 = vsel %vm90_vm0, %v34_v32, 0.0  ;;  %v40_v10 = vld [vmem:[#allocation2 + $0x70] sm:$0xff]  ;;  %v41_v17 = vld [vmem:[#allocation2 + $0x78] sm:$0xff]  ;;  %s179_s24 = sshll.u32 %s261_s1, 4  ;;  %s180_s24 = int_to_ptr.vmem [resolvable:$true] %s179_s24 }
  0x1a   :  { %v126_v34 = vadd.f32 %v125_v25, %v124_v28  ;;  %v129_v37 = vsel %vm90_vm0, %v62_v20, 0.0  ;;  %v65_v41 = vcombine.high %v33_v26, %v33_v26  ;;  %v108_v42 = vsel %vm90_vm0, %v35_v38, 0.0  ;;  %s232_s25 = scalar_lea.vmem %s180_s24, 128  ;;  %p237_p9 = scmp.lt.s32.totalorder %s180_s24, %s180_s24 }
  0x1b   :  { %v99_v21 = vadd.f32 %v98_v14, %v97_v16  ;;  %v131_v43 = vsel %vm90_vm0, %v63_v29, 0.0  ;;  %v66_v47 = vcombine.high %v34_v32, %v34_v32  ;;  %v110_v48 = vsel %vm90_vm0, %v36_v44, 0.0  ;;  %p233_p8 = scmp.ne.s32.totalorder %s180_s24, %s232_s25  ;;  %p238_p10 = scmp.lt.s32.totalorder %s232_s25, %s232_s25 }
  0x1c   :  { %v128_v40 = vadd.f32 %v127_v31, %v126_v34  ;;  %v133_v49 = vsel %vm90_vm0, %v64_v35, 0.0  ;;  %v67_v54 = vcombine.high %v35_v38, %v35_v38  ;;  %v112_v55 = vsel %vm90_vm0, %v37_v50, 0.0 }
  0x1d   :  { %v101_v27 = vadd.f32 %v100_v18, %v99_v21  ;;  %v135_v56 = vsel %vm90_vm0, %v65_v41, 0.0  ;;  %v68_v60 = vcombine.high %v36_v44, %v36_v44  ;;  %v114_v61 = vsel %vm90_vm0, %v38_v57, 0.0  ;;  %p239_p11 = por %p238_p10, %p237_p9 }
  0x1e   :  { %v130_v46 = vadd.f32 %v129_v37, %v128_v40  ;;  %v137_v62 = vsel %vm90_vm0, %v66_v47, 0.0  ;;  %208 = vrcp.f32 %v153_v53  ;;  %v156_v2 = vlaneseq }
  0x1f   :  { %v103_v33 = vadd.f32 %v102_v22, %v101_v27  ;;  %v69_v3 = vcombine.high %v37_v50, %v37_v50  ;;  %v116_v4 = vsel %vm90_vm0, %v39_v63, 0.0  ;;  %v139_v5 = vsel %vm90_vm0, %v67_v54, 0.0  ;;  %p240_p12 = pnand %p239_p11, %p233_p8 }
  0x20   :  { %v132_v52 = vadd.f32 %v131_v43, %v130_v46  ;;  %v70_v8 = vcombine.high %v38_v57, %v38_v57  ;;  %v141_v9 = vsel %vm90_vm0, %v68_v60, 0.0  ;;  %v157_v13 = vshrl.u32 %v156_v2, 7 }
  0x21   :  { %v105_v39 = vadd.f32 %v104_v30, %v103_v33  ;;  %v71_v14 = vcombine.high %v39_v63, %v39_v63  ;;  %v118_v15 = vsel %vm90_vm0, %v40_v10, 0.0  ;;  %v143_v16 = vsel %vm90_vm0, %v69_v3, 0.0 }
  0x22   :  { %v134_v59 = vadd.f32 %v133_v49, %v132_v52  ;;  %v72_v19 = vcombine.high %v40_v10, %v40_v10  ;;  %v145_v20 = vsel %vm90_vm0, %v70_v8, 0.0  ;;  %v158_v23 = vsub.s32 0, %v157_v13 }
  0x23   :  { %v107_v45 = vadd.f32 %v106_v36, %v105_v39  ;;  %v73_v25 = vcombine.high %v41_v17, %v41_v17  ;;  %v120_v26 = vsel %vm90_vm0, %v41_v17, 0.0  ;;  %v147_v27 = vsel %vm90_vm0, %v71_v14, 0.0 }
  0x24   :  { %v136_v1 = vadd.f32 %v135_v56, %v134_v59  ;;  %v162_v29 = vsub.s32 1, %v157_v13  ;;  %v149_v30 = vsel %vm90_vm0, %v72_v19, 0.0 }
  0x25   :  { %v109_v51 = vadd.f32 %v108_v42, %v107_v45  ;;  %v151_v34 = vsel %vm90_vm0, %v73_v25, 0.0 }
  0x26   :  { %v138_v7 = vadd.f32 %v137_v62, %v136_v1 }
  0x27   :  { %v111_v58 = vadd.f32 %v110_v48, %v109_v51 }
  0x28   :  { %v140_v12 = vadd.f32 %v139_v5, %v138_v7  ;;  %v209_v24 = vpop.eup %208 }
  0x29   :  { %v113_v0 = vadd.f32 %v112_v55, %v111_v58  ;;  %v159_v33 = vrot.slane %v209_v24, %v158_v23  ;;  %v163_v36 = vrot.slane %v209_v24, %v162_v29 }
  0x2a   :  { %v142_v18 = vadd.f32 %v141_v9, %v140_v12 }
  0x2b   :  { %v115_v6 = vadd.f32 %v114_v61, %v113_v0 }
  0x2c   :  { %v144_v22 = vadd.f32 %v143_v16, %v142_v18 }
  0x2d   :  { %v117_v11 = vadd.f32 %v116_v4, %v115_v6 }
  0x2e   :  { %v146_v28 = vadd.f32 %v145_v20, %v144_v22 }
  0x2f   :  { %v119_v21 = vadd.f32 %v118_v15, %v117_v11 }
  0x30   :  { %v148_v32 = vadd.f32 %v147_v27, %v146_v28 }
  0x31   :  { %v121_v31 = vadd.f32 %v120_v26, %v119_v21 }
  0x32   :  { %v150_v35 = vadd.f32 %v149_v30, %v148_v32 }
  0x33   :  { %v166_v38 = vmul.f32 %v159_v33, %v121_v31 }
  0x34   :  { %v152_v37 = vadd.f32 %v151_v34, %v150_v35 }
  0x36   :  { %v167_v39 = vmul.f32 %v163_v36, %v152_v37 }
  0x38   :  { %v170_v40 = vcombine.low %v166_v38, %v167_v39 }
  0x3a   :  { %172 = vst [vmem:[#allocation5] sm:$0xff] %v170_v40 }
  0x3b   :  { %243 = shalt.err (!%p240_p12)
}
  0x3c   :  { %s244_s28 = scalar_lea.hbm %s338_s2, 128 }
  0x3d   :  { %p245_p13 = scmp.ne.s32.totalorder %s338_s2, %s244_s28  ;;  %p248_p0 = scmp.lt.u32.totalorder %s244_s28, %s338_s2 }
  0x3f   :  { %p250_p1 = pnand %p248_p0, %p245_p13 }
  0x41   :  { %253 = shalt.err (!%p250_p1)
}
  0x42   :  { %182 = dma.vmem_to_hbm [thread:$0]  %s180_s24, 128, %s338_s2, [#allocation4]  }
  0x43   :  { %256 = dma.done.wait [#allocation4], 128  }
  0x44   :  { %257 = vsyncadd [#allocation4], 4294967168 }
  0x45   :  { %186 = vsyncpa [#allocation3], 1 }
  0x46   :  { %187 = vsyncpa [#allocation4], 1 }

</bundles_post_ra>
